<compile_context>
chip_gen: v6e
topology: v6e:2x2x1
jax: 0.10.0
libtpu: 0.0.40
codegen_flags: <defaults>
</compile_context>

<pallas_src>
import jax
import jax.numpy as jnp
from jax import lax
from jax.experimental import pallas as pl
from jax.experimental.pallas import tpu as pltpu

H1 = 32                 # fc1 out
H2 = 64                 # fc2 out
OUT_FEATURES = 128
CLAMP_LO = 0.0 - 1.0    # self.min - 1
CLAMP_HI = 1.0 + 1.0    # self.max + 1
NORM_EPS = 1e-12        # F.normalize default eps


def num2vec_kernel(x_ref, w1_ref, b1_ref, w2_ref, b2_ref, w3_ref, b3_ref, o_ref):
    # x_ref: (tm, 1) f32 — one scalar feature per row (rows on sublanes).
    x = jnp.clip(x_ref[...], CLAMP_LO, CLAMP_HI)

    # fc1: in_features == 1 → degenerate matmul = VPU broadcast mul/add.
    h = jnp.maximum(x * w1_ref[...] + b1_ref[...], 0.0)               # (tm, 32) f32

    # fc2 / fc3: bf16 operands on the MXU, f32 accumulation, f32 bias + relu.
    h2 = jnp.dot(h.astype(jnp.bfloat16), w2_ref[...],
                 preferred_element_type=jnp.float32) + b2_ref[...]
    h2 = jnp.maximum(h2, 0.0)                                         # (tm, 64) f32

    wh = jnp.dot(h2.astype(jnp.bfloat16), w3_ref[...],
                 preferred_element_type=jnp.float32) + b3_ref[...]    # (tm, 128) f32

    # F.normalize: row / max(||row||, eps) == row * rsqrt(max(||row||^2, eps^2))
    sq = jnp.sum(wh * wh, axis=-1, keepdims=True)                     # (tm, 1)
    inv = lax.rsqrt(jnp.maximum(sq, NORM_EPS * NORM_EPS))             # EUP, per-row
    o_ref[...] = jnp.maximum(wh * inv, 0.0).astype(o_ref.dtype)


def _round_up(n, m):
    return -(-n // m) * m


def _pick_tm(n, tm_max=4096, two_step_min_rows=2048):
    """Row tile: as large as possible (amortize ~0.35 µs/step), but
       * keep >= 2 grid steps once N is big enough so v7x's 2 TCs both work,
       * cap at tm_max so the per-step VMEM budget fits every generation
         (incl. v5e) under the explicit 32 MiB vmem_limit below."""
    n8 = _round_up(max(n, 1), 8)
    if n8 <= tm_max:
        if n8 >= two_step_min_rows:
            return _round_up(pl.cdiv(n8, 2), 8)   # 2 parallel steps for v7x
        return n8                                 # single step covers all rows
    return tm_max


def num2vec_forward(batch_x, params, *, tm=None, out_dtype=jnp.float32):
    """batch_x: (N,) float32. Returns (N, OUT_FEATURES) in out_dtype (f32 default).
    out_dtype=jnp.bfloat16 halves the dominant writeback stream but is a
    precision change requiring consumer sign-off, so it is opt-in only."""
    w1, b1, w2, b2, w3, b3 = params
    n = batch_x.shape[0]
    if tm is None:
        tm = _pick_tm(n)
    tm = _round_up(tm, 8)

    x = batch_x.astype(jnp.float32)[:, None]                          # (n, 1)
    # One-time operand cast for the MXU (no-op if params are already bf16).
    w2b = w2.astype(jnp.bfloat16)
    w3b = w3.astype(jnp.bfloat16)

    # No padding / no post-kernel slice: cdiv grid, partial last block masked.
    grid = (pl.cdiv(n, tm),)
    full = lambda i: (0, 0)                                           # resident weights

    out_bytes = jnp.dtype(out_dtype).itemsize
    flops = 2 * n * (H1 + H1 * H2 + H2 * OUT_FEATURES)
    weight_bytes = 2 * (H1 * H2 + H2 * OUT_FEATURES) + 4 * (2 * H1 + H2 + OUT_FEATURES)
    bytes_accessed = n * 4 + n * OUT_FEATURES * out_bytes + weight_bytes

    out = pl.pallas_call(
        num2vec_kernel,
        out_shape=jax.ShapeDtypeStruct((n, OUT_FEATURES), out_dtype),
        grid_spec=pltpu.PrefetchScalarGridSpec(
            num_scalar_prefetch=0,
            grid=grid,
            in_specs=[
                pl.BlockSpec((tm, 1), lambda i: (i, 0)),              # x rows
                pl.BlockSpec((1, H1), full),                          # w1 (1,32)  f32
                pl.BlockSpec((1, H1), full),                          # b1         f32
                pl.BlockSpec((H1, H2), full),                         # w2 (32,64) bf16
                pl.BlockSpec((1, H2), full),                          # b2         f32
                pl.BlockSpec((H2, OUT_FEATURES), full),               # w3 (64,128) bf16
                pl.BlockSpec((1, OUT_FEATURES), full),                # b3         f32
            ],
            out_specs=pl.BlockSpec((tm, OUT_FEATURES), lambda i: (i, 0)),
        ),
        compiler_params=pltpu.CompilerParams(
            dimension_semantics=("parallel",),
            vmem_limit_bytes=32 * 1024 * 1024,   # explicit budget: safe on v5e/v6e/v7x
        ),
        cost_estimate=pl.CostEstimate(
            flops=flops, transcendentals=n, bytes_accessed=bytes_accessed),
    )(x, w1, b1, w2b, b2, w3b, b3)

    return out


def init_params(key):
    """Deterministic PyTorch-style Linear init: U(-1/sqrt(fan_in), 1/sqrt(fan_in)).
    Weights stored pre-transposed as (in, out) so the kernel does x @ W + b."""
    ks = jax.random.split(key, 6)

    def lin(kw, kb, fan_in, fan_out):
        bound = 1.0 / jnp.sqrt(float(fan_in))
        w = jax.random.uniform(kw, (fan_in, fan_out), jnp.float32, -bound, bound)
        b = jax.random.uniform(kb, (1, fan_out), jnp.float32, -bound, bound)
        return w, b

    w1, b1 = lin(ks[0], ks[1], 1, H1)
    w2, b2 = lin(ks[2], ks[3], H1, H2)
    w3, b3 = lin(ks[4], ks[5], H2, OUT_FEATURES)
    return (w1, b1, w2, b2, w3, b3)


def num2vec_reference(batch_x, params, *, matmul_dtype=jnp.float32):
    """Pure-JAX reference. matmul_dtype=bf16 mirrors the kernel's MXU operand
    precision (tight check); f32 is the original PyTorch-spec math (loose check)."""
    w1, b1, w2, b2, w3, b3 = params
    x = batch_x.astype(jnp.float32)[:, None]
    x = jnp.clip(x, CLAMP_LO, CLAMP_HI)
    h = jnp.maximum(x * w1 + b1, 0.0)
    h = jnp.dot(h.astype(matmul_dtype), w2.astype(matmul_dtype),
                preferred_element_type=jnp.float32) + b2
    h = jnp.maximum(h, 0.0)
    wh = jnp.dot(h.astype(matmul_dtype), w3.astype(matmul_dtype),
                 preferred_element_type=jnp.float32) + b3
    norm = jnp.sqrt(jnp.sum(wh * wh, axis=-1, keepdims=True))
    hp = wh / jnp.maximum(norm, NORM_EPS)
    return jnp.maximum(hp, 0.0)


if __name__ == "__main__":
    key = jax.random.PRNGKey(0)
    k_params, k_x = jax.random.split(key)

    params = init_params(k_params)

    N = 256  # small demo batch; cdiv grid + masked tail handles arbitrary N
    # raw numeric inputs (some outside [min-1, max+1] to exercise the clamp)
    batch_x = jax.random.uniform(k_x, (N,), jnp.float32, -2.0, 3.0)

    out = num2vec_forward(batch_x, params)
    out = jax.block_until_ready(out)

    assert out.shape == (N, OUT_FEATURES)
    assert out.dtype == jnp.float32

    # Tight check vs. a matched-precision reference (bf16 MXU operands, f32 acc).
    ref_bf16 = num2vec_reference(batch_x, params, matmul_dtype=jnp.bfloat16)
    assert jnp.allclose(out, ref_bf16, atol=1e-4, rtol=1e-4), "mismatch vs bf16-matmul reference"

    # Loose check vs. the full-f32 PyTorch-spec reference (bf16 operand rounding,
    # reviewer-flagged precision delta; outputs are normalized, so ~1e-2 scale).
    ref_f32 = num2vec_reference(batch_x, params, matmul_dtype=jnp.float32)
    assert jnp.allclose(out, ref_f32, atol=3e-2, rtol=3e-2), "mismatch vs f32 reference"

    print("KERNEL_OK")
</pallas_src>

<mosaic_0001>
module attributes {stable_mosaic.version = 11 : i64} {
  func.func @num2vec_kernel(%arg0: i32, %arg1: memref<256x1xf32, #tpu.memory_space<vmem>>, %arg2: memref<1x32xf32, #tpu.memory_space<vmem>>, %arg3: memref<1x32xf32, #tpu.memory_space<vmem>>, %arg4: memref<32x64xbf16, #tpu.memory_space<vmem>>, %arg5: memref<1x64xf32, #tpu.memory_space<vmem>>, %arg6: memref<64x128xbf16, #tpu.memory_space<vmem>>, %arg7: memref<1x128xf32, #tpu.memory_space<vmem>>, %arg8: memref<256x128xf32, #tpu.memory_space<vmem>>) attributes {dimension_semantics = [#tpu.dimension_semantics<parallel>], iteration_bounds = array<i64: 1>, scalar_prefetch = 0 : i64, scratch_operands = 0 : i64, tpu.core_type = #tpu.core_type<tc>, window_params = [{transform_indices = @transform_0, window_bounds = array<i64: 256, 1>}, {pipeline_mode = #tpu.pipeline_mode<synchronous>, transform_indices = @transform_1, window_bounds = array<i64: 1, 32>}, {pipeline_mode = #tpu.pipeline_mode<synchronous>, transform_indices = @transform_2, window_bounds = array<i64: 1, 32>}, {pipeline_mode = #tpu.pipeline_mode<synchronous>, transform_indices = @transform_3, window_bounds = array<i64: 32, 64>}, {pipeline_mode = #tpu.pipeline_mode<synchronous>, transform_indices = @transform_4, window_bounds = array<i64: 1, 64>}, {pipeline_mode = #tpu.pipeline_mode<synchronous>, transform_indices = @transform_5, window_bounds = array<i64: 64, 128>}, {pipeline_mode = #tpu.pipeline_mode<synchronous>, transform_indices = @transform_6, window_bounds = array<i64: 1, 128>}, {transform_indices = @transform_7, window_bounds = array<i64: 256, 128>}]} {
    %c0 = arith.constant 0 : index
    %c0_0 = arith.constant 0 : index
    %0 = vector.load %arg1[%c0, %c0_0] : memref<256x1xf32, #tpu.memory_space<vmem>>, vector<256x1xf32>
    %cst = arith.constant -1.000000e+00 : f32
    %cst_1 = arith.constant 2.000000e+00 : f32
    %1 = vector.broadcast %cst : f32 to vector<256x1xf32>
    %2 = arith.maximumf %1, %0 : vector<256x1xf32>
    %3 = vector.broadcast %cst_1 : f32 to vector<256x1xf32>
    %4 = arith.minimumf %3, %2 : vector<256x1xf32>
    %c0_2 = arith.constant 0 : index
    %c0_3 = arith.constant 0 : index
    %5 = vector.load %arg2[%c0_2, %c0_3] : memref<1x32xf32, #tpu.memory_space<vmem>>, vector<1x32xf32>
    %6 = vector.broadcast %4 : vector<256x1xf32> to vector<256x32xf32>
    %7 = vector.broadcast %5 : vector<1x32xf32> to vector<256x32xf32>
    %8 = arith.mulf %6, %7 : vector<256x32xf32>
    %c0_4 = arith.constant 0 : index
    %c0_5 = arith.constant 0 : index
    %9 = vector.load %arg3[%c0_4, %c0_5] : memref<1x32xf32, #tpu.memory_space<vmem>>, vector<1x32xf32>
    %10 = vector.broadcast %9 : vector<1x32xf32> to vector<256x32xf32>
    %11 = arith.addf %8, %10 : vector<256x32xf32>
    %cst_6 = arith.constant 0.000000e+00 : f32
    %12 = vector.broadcast %cst_6 : f32 to vector<256x32xf32>
    %13 = arith.maximumf %11, %12 : vector<256x32xf32>
    %14 = arith.truncf %13 : vector<256x32xf32> to vector<256x32xbf16>
    %c0_7 = arith.constant 0 : index
    %c0_8 = arith.constant 0 : index
    %15 = vector.load %arg4[%c0_7, %c0_8] : memref<32x64xbf16, #tpu.memory_space<vmem>>, vector<32x64xbf16>
    %cst_9 = arith.constant dense<0.000000e+00> : vector<256x64xf32>
    %16 = tpu.matmul %14, %15, %cst_9 {dimension_numbers = #tpu.dot_dimension_numbers<[1], [0], [0], [1], [0, 0, 1, 1], [], []>} : vector<256x32xbf16>, vector<32x64xbf16>, vector<256x64xf32> -> vector<256x64xf32>
    %c0_10 = arith.constant 0 : index
    %c0_11 = arith.constant 0 : index
    %17 = vector.load %arg5[%c0_10, %c0_11] : memref<1x64xf32, #tpu.memory_space<vmem>>, vector<1x64xf32>
    %18 = vector.broadcast %17 : vector<1x64xf32> to vector<256x64xf32>
    %19 = arith.addf %16, %18 : vector<256x64xf32>
    %cst_12 = arith.constant 0.000000e+00 : f32
    %20 = vector.broadcast %cst_12 : f32 to vector<256x64xf32>
    %21 = arith.maximumf %19, %20 : vector<256x64xf32>
    %22 = arith.truncf %21 : vector<256x64xf32> to vector<256x64xbf16>
    %c0_13 = arith.constant 0 : index
    %c0_14 = arith.constant 0 : index
    %23 = vector.load %arg6[%c0_13, %c0_14] : memref<64x128xbf16, #tpu.memory_space<vmem>>, vector<64x128xbf16>
    %cst_15 = arith.constant dense<0.000000e+00> : vector<256x128xf32>
    %24 = tpu.matmul %22, %23, %cst_15 {dimension_numbers = #tpu.dot_dimension_numbers<[1], [0], [0], [1], [0, 0, 1, 1], [], []>} : vector<256x64xbf16>, vector<64x128xbf16>, vector<256x128xf32> -> vector<256x128xf32>
    %c0_16 = arith.constant 0 : index
    %c0_17 = arith.constant 0 : index
    %25 = vector.load %arg7[%c0_16, %c0_17] : memref<1x128xf32, #tpu.memory_space<vmem>>, vector<1x128xf32>
    %26 = vector.broadcast %25 : vector<1x128xf32> to vector<256x128xf32>
    %27 = arith.addf %24, %26 : vector<256x128xf32>
    %28 = arith.mulf %27, %27 : vector<256x128xf32>
    %cst_18 = arith.constant dense<0.000000e+00> : vector<256xf32>
    %29 = vector.multi_reduction <add>, %28, %cst_18 [1] : vector<256x128xf32> to vector<256xf32>
    %30 = vector.shape_cast %29 : vector<256xf32> to vector<256x1xf32>
    %cst_19 = arith.constant 1.000000e-24 : f32
    %31 = vector.broadcast %cst_19 : f32 to vector<256x1xf32>
    %32 = arith.maximumf %30, %31 : vector<256x1xf32>
    %33 = math.rsqrt %32 : vector<256x1xf32>
    %34 = vector.broadcast %33 : vector<256x1xf32> to vector<256x128xf32>
    %35 = arith.mulf %27, %34 : vector<256x128xf32>
    %cst_20 = arith.constant 0.000000e+00 : f32
    %36 = vector.broadcast %cst_20 : f32 to vector<256x128xf32>
    %37 = arith.maximumf %35, %36 : vector<256x128xf32>
    %c0_21 = arith.constant 0 : index
    %c0_22 = arith.constant 0 : index
    %38 = vector.load %arg8[%c0_21, %c0_22] : memref<256x128xf32, #tpu.memory_space<vmem>>, vector<256x128xf32>
    tpu.vector_store %arg8[%c0_21, %c0_22], %37 {strides = array<i32>} : memref<256x128xf32, #tpu.memory_space<vmem>>, vector<256x128xf32>,
    return
  }
  func.func @transform_0(%arg0: i32) -> (i32, i32) {
    %c0_i32 = arith.constant 0 : i32
    %c0_i32_0 = arith.constant 0 : i32
    return %arg0, %c0_i32 : i32, i32
  }
  func.func @transform_1(%arg0: i32) -> (i32, i32) {
    %c0_i32 = arith.constant 0 : i32
    %c0_i32_0 = arith.constant 0 : i32
    %c0_i32_1 = arith.constant 0 : i32
    return %c0_i32, %c0_i32_0 : i32, i32
  }
  func.func @transform_2(%arg0: i32) -> (i32, i32) {
    %c0_i32 = arith.constant 0 : i32
    %c0_i32_0 = arith.constant 0 : i32
    %c0_i32_1 = arith.constant 0 : i32
    return %c0_i32, %c0_i32_0 : i32, i32
  }
  func.func @transform_3(%arg0: i32) -> (i32, i32) {
    %c0_i32 = arith.constant 0 : i32
    %c0_i32_0 = arith.constant 0 : i32
    %c0_i32_1 = arith.constant 0 : i32
    return %c0_i32, %c0_i32_0 : i32, i32
  }
  func.func @transform_4(%arg0: i32) -> (i32, i32) {
    %c0_i32 = arith.constant 0 : i32
    %c0_i32_0 = arith.constant 0 : i32
    %c0_i32_1 = arith.constant 0 : i32
    return %c0_i32, %c0_i32_0 : i32, i32
  }
  func.func @transform_5(%arg0: i32) -> (i32, i32) {
    %c0_i32 = arith.constant 0 : i32
    %c0_i32_0 = arith.constant 0 : i32
    %c0_i32_1 = arith.constant 0 : i32
    return %c0_i32, %c0_i32_0 : i32, i32
  }
  func.func @transform_6(%arg0: i32) -> (i32, i32) {
    %c0_i32 = arith.constant 0 : i32
    %c0_i32_0 = arith.constant 0 : i32
    %c0_i32_1 = arith.constant 0 : i32
    return %c0_i32, %c0_i32_0 : i32, i32
  }
  func.func @transform_7(%arg0: i32) -> (i32, i32) {
    %c0_i32 = arith.constant 0 : i32
    %c0_i32_0 = arith.constant 0 : i32
    return %arg0, %c0_i32 : i32, i32
  }
}

</mosaic_0001>

<bundles_post_ra>
// kernel: tpu_custom_call.1
= control target key start
LH: loop header
LB: loop body
LE: loop exit
PB: predicated region body
PF: predicated region fallthrough
CT: control target
= control target key end

     0   :  { %v1466_v3 = vmov 0   ;;  %s1967_s0 = inlined_call_operand.vmem [shape: f32[256,1], index: 0, kind: input, shape index: {}]   ;;  %s1968_s1 = inlined_call_operand.vmem [shape: f32[1,32], index: 1, kind: input, shape index: {}]   ;;  %s1969_s2 = inlined_call_operand.vmem [shape: f32[1,32], index: 2, kind: input, shape index: {}]   ;;  %s1970_s3 = inlined_call_operand.vmem [shape: bf16[32,64], index: 3, kind: input, shape index: {}]   ;;  %s1971_s4 = inlined_call_operand.vmem [shape: f32[1,64], index: 4, kind: input, shape index: {}]   ;;  %s1972_s5 = inlined_call_operand.vmem [shape: bf16[64,128], index: 5, kind: input, shape index: {}]   ;;  %s1973_s6 = inlined_call_operand.vmem [shape: f32[1,128], index: 6, kind: input, shape index: {}]   ;;  %s1974_s7 = inlined_call_operand.hbm [shape: f32[256,128], index: 7, kind: output, shape index: {}]  }
   0x1   :  { %v30_v0 = vld [vmem:[%s1967_s0 + $0x10] sm:$0xff]  ;;  %v28_v1 = vld [vmem:[%s1967_s0] sm:$0xff]  ;;  %v31_v2 = vld [vmem:[%s1967_s0 + $0x18] sm:$0xff]  ;;  %1373 = vset.pattern.permute.xlu1 %v1466_v3  ;;  %1372 = vset.pattern.permute.xlu0 %v1466_v3 }
   0x2   :  { %v62_v4 = vmax.f32 %v30_v0, -1.0  ;;  %v60_v5 = vmax.f32 %v28_v1, -1.0  ;;  %v63_v6 = vmax.f32 %v31_v2, -1.0  ;;  %v29_v7 = vld [vmem:[%s1967_s0 + $0x8] sm:$0xff]  ;;  %v32_v10 = vld [vmem:[%s1967_s0 + $0x20] sm:$0xff]  ;;  %v35_v17 = vld [vmem:[%s1967_s0 + $0x38] sm:$0xff] }
   0x3   :  { %v61_v8 = vmax.f32 %v29_v7, -1.0  ;;  %v33_v9 = vld [vmem:[%s1967_s0 + $0x28] sm:$0xff]  ;;  %v64_v16 = vmax.f32 %v32_v10, -1.0  ;;  %v34_v18 = vld [vmem:[%s1967_s0 + $0x30] sm:$0xff]  ;;  %v67_v21 = vmax.f32 %v35_v17, -1.0  ;;  %v36_v24 = vld [vmem:[%s1967_s0 + $0x40] sm:$0xff] }
   0x4   :  { %v94_v11 = vmin.f32 %v62_v4, 2.0  ;;  %v92_v12 = vmin.f32 %v60_v5, 2.0  ;;  %v95_v13 = vmin.f32 %v63_v6, 2.0  ;;  %v65_v15 = vmax.f32 %v33_v9, -1.0  ;;  %v37_v23 = vld [vmem:[%s1967_s0 + $0x48] sm:$0xff]  ;;  %v39_v25 = vld [vmem:[%s1967_s0 + $0x58] sm:$0xff] }
   0x5   :  { %v93_v14 = vmin.f32 %v61_v8, 2.0  ;;  %v96_v20 = vmin.f32 %v64_v16, 2.0  ;;  %v66_v22 = vmax.f32 %v34_v18, -1.0  ;;  %v38_v26 = vld [vmem:[%s1967_s0 + $0x50] sm:$0xff]  ;;  %v69_v27 = vmax.f32 %v37_v23, -1.0  ;;  %v41_v31 = vld [vmem:[%s1967_s0 + $0x68] sm:$0xff] }
   0x6   :  { %137 = vperm.xlu1 %1373, %v94_v11   ;;  %127 = vperm.xlu0 %1372, %v92_v12   ;;  %v97_v19 = vmin.f32 %v65_v15, 2.0  ;;  %v99_v28 = vmin.f32 %v67_v21, 2.0  ;;  %v68_v30 = vmax.f32 %v36_v24, -1.0  ;;  %v40_v32 = vld [vmem:[%s1967_s0 + $0x60] sm:$0xff]  ;;  %v71_v33 = vmax.f32 %v39_v25, -1.0  ;;  %v1374_v35 = vld [vmem:[%s1970_s3 + $0x8] sm:$0xff]  }
   0x7   :  { %v98_v29 = vmin.f32 %v66_v22, 2.0  ;;  %v70_v34 = vmax.f32 %v38_v26, -1.0  ;;  %v101_v36 = vmin.f32 %v69_v27, 2.0  ;;  %v73_v37 = vmax.f32 %v41_v31, -1.0  ;;  %1292 = vmatprep.subr.bf16.mxu0 %v1374_v35  ;;  %v1375_v40 = vld [vmem:[%s1970_s3] sm:$0xff]  }
   0x8   :  { %v72_v38 = vmax.f32 %v40_v32, -1.0  ;;  %v100_v39 = vmin.f32 %v68_v30, 2.0  ;;  %v103_v41 = vmin.f32 %v71_v33, 2.0  ;;  %1293 = vmatpush3.bf16.msra.mxu0 %v1374_v35 }
   0x9   :  { %v102_v42 = vmin.f32 %v70_v34, 2.0  ;;  %1294 = vmatprep.subr.bf16.mxu0 %v1375_v40 }
   0xa   :  { %142 = vperm.xlu1 %1373, %v95_v13   ;;  %132 = vperm.xlu0 %1372, %v93_v14  }
   0xe   :  { %152 = vperm.xlu1 %1373, %v97_v19   ;;  %147 = vperm.xlu0 %1372, %v96_v20  }
  0x12   :  { %162 = vperm.xlu1 %1373, %v99_v28   ;;  %157 = vperm.xlu0 %1372, %v98_v29  }
  0x16   :  { %172 = vperm.xlu1 %1373, %v101_v36   ;;  %167 = vperm.xlu0 %1372, %v100_v39  }
  0x17   :  { %12 = vsyncpa [#allocation3], 0  ;;  %v43_v43 = vld [vmem:[%s1967_s0 + $0x78] sm:$0xff]  ;;  %v42_v44 = vld [vmem:[%s1967_s0 + $0x70] sm:$0xff]  ;;  %1295 = vmatpush3.bf16.msra.mxu0 %v1375_v40  ;;  %v105_v45 = vmin.f32 %v73_v37, 2.0  ;;  %v104_v46 = vmin.f32 %v72_v38, 2.0 }
  0x18   :  { %v75_v47 = vmax.f32 %v43_v43, -1.0  ;;  %v74_v48 = vmax.f32 %v42_v44, -1.0  ;;  %v45_v49 = vld [vmem:[%s1967_s0 + $0x88] sm:$0xff]  ;;  %v44_v50 = vld [vmem:[%s1967_s0 + $0x80] sm:$0xff]  ;;  %v47_v55 = vld [vmem:[%s1967_s0 + $0x98] sm:$0xff]  ;;  %vm433_vm0 = vcmask 261120  }
  0x19   :  { %v77_v53 = vmax.f32 %v45_v49, -1.0  ;;  %v76_v54 = vmax.f32 %v44_v50, -1.0  ;;  %v46_v56 = vld [vmem:[%s1967_s0 + $0x90] sm:$0xff]  ;;  %v79_v59 = vmax.f32 %v47_v55, -1.0  ;;  %v49_v61 = vld [vmem:[%s1967_s0 + $0xa8] sm:$0xff]  ;;  %v48_v62 = vld [vmem:[%s1967_s0 + $0xa0] sm:$0xff] }
  0x1a   :  { %182 = vperm.xlu1 %1373, %v103_v41   ;;  %177 = vperm.xlu0 %1372, %v102_v42   ;;  %v107_v51 = vmin.f32 %v75_v47, 2.0  ;;  %v106_v52 = vmin.f32 %v74_v48, 2.0  ;;  %v78_v60 = vmax.f32 %v46_v56, -1.0  ;;  %v81_v1 = vmax.f32 %v49_v61, -1.0  ;;  %v51_v3 = vld [vmem:[%s1967_s0 + $0xb8] sm:$0xff]  ;;  %v50_v4 = vld [vmem:[%s1967_s0 + $0xb0] sm:$0xff] }
  0x1b   :  { %v109_v57 = vmin.f32 %v77_v53, 2.0  ;;  %v108_v58 = vmin.f32 %v76_v54, 2.0  ;;  %v111_v63 = vmin.f32 %v79_v59, 2.0  ;;  %v80_v2 = vmax.f32 %v48_v62, -1.0  ;;  %v53_v9 = vld [vmem:[%s1967_s0 + $0xc8] sm:$0xff]  ;;  %v52_v10 = vld [vmem:[%s1967_s0 + $0xc0] sm:$0xff] }
  0x1c   :  { %v110_v0 = vmin.f32 %v78_v60, 2.0  ;;  %v113_v5 = vmin.f32 %v81_v1, 2.0  ;;  %v83_v7 = vmax.f32 %v51_v3, -1.0  ;;  %v82_v8 = vmax.f32 %v50_v4, -1.0  ;;  %v55_v15 = vld [vmem:[%s1967_s0 + $0xd8] sm:$0xff]  ;;  %v54_v16 = vld [vmem:[%s1967_s0 + $0xd0] sm:$0xff] }
  0x1d   :  { %v112_v6 = vmin.f32 %v80_v2, 2.0  ;;  %v85_v13 = vmax.f32 %v53_v9, -1.0  ;;  %v84_v14 = vmax.f32 %v52_v10, -1.0  ;;  %v87_v19 = vmax.f32 %v55_v15, -1.0  ;;  %v57_v21 = vld [vmem:[%s1967_s0 + $0xe8] sm:$0xff]  ;;  %v56_v22 = vld [vmem:[%s1967_s0 + $0xe0] sm:$0xff] }
  0x1e   :  { %192 = vperm.xlu1 %1373, %v105_v45   ;;  %187 = vperm.xlu0 %1372, %v104_v46   ;;  %v115_v11 = vmin.f32 %v83_v7, 2.0  ;;  %v114_v12 = vmin.f32 %v82_v8, 2.0  ;;  %v86_v20 = vmax.f32 %v54_v16, -1.0  ;;  %v89_v25 = vmax.f32 %v57_v21, -1.0  ;;  %v59_v27 = vld [vmem:[%s1967_s0 + $0xf8] sm:$0xff]  ;;  %v58_v28 = vld [vmem:[%s1967_s0 + $0xf0] sm:$0xff] }
  0x1f   :  { %v117_v17 = vmin.f32 %v85_v13, 2.0  ;;  %v116_v18 = vmin.f32 %v84_v14, 2.0  ;;  %v119_v23 = vmin.f32 %v87_v19, 2.0  ;;  %v88_v26 = vmax.f32 %v56_v22, -1.0  ;;  %v1376_v35 = vld [vmem:[%s1972_s5 + $0x18] sm:$0xff]  }
  0x20   :  { %v118_v24 = vmin.f32 %v86_v20, 2.0  ;;  %v121_v29 = vmin.f32 %v89_v25, 2.0  ;;  %v91_v31 = vmax.f32 %v59_v27, -1.0  ;;  %v90_v32 = vmax.f32 %v58_v28, -1.0  ;;  %1328 = vmatprep.subr.bf16.mxu1 %v1376_v35  ;;  %v1618_v36 = vld [vmem:[%s1968_s1] ss:$0 sm:$0xff] }
  0x21   :  { %v120_v30 = vmin.f32 %v88_v26, 2.0  ;;  %1329 = vmatpush3.bf16.msra.mxu1 %v1376_v35  ;;  %v1623_v39 = vld [vmem:[%s1969_s2] ss:$0 sm:$0xff]  ;;  %vm730_vm1 = vcmask 523264  }
  0x22   :  { %202 = vperm.xlu1 %1373, %v107_v51   ;;  %197 = vperm.xlu0 %1372, %v106_v52   ;;  %v123_v33 = vmin.f32 %v91_v31, 2.0  ;;  %v122_v34 = vmin.f32 %v90_v32, 2.0 }
  0x26   :  { %212 = vperm.xlu1 %1373, %v109_v57   ;;  %207 = vperm.xlu0 %1372, %v108_v58  }
  0x2a   :  { %222 = vperm.xlu1 %1373, %v111_v63   ;;  %217 = vperm.xlu0 %1372, %v110_v0  }
  0x2e   :  { %232 = vperm.xlu1 %1373, %v113_v5   ;;  %227 = vperm.xlu0 %1372, %v112_v6  }
  0x32   :  { %242 = vperm.xlu1 %1373, %v115_v11   ;;  %237 = vperm.xlu0 %1372, %v114_v12  }
  0x36   :  { %252 = vperm.xlu1 %1373, %v117_v17   ;;  %247 = vperm.xlu0 %1372, %v116_v18  }
  0x3a   :  { %262 = vperm.xlu1 %1373, %v119_v23   ;;  %257 = vperm.xlu0 %1372, %v118_v24  }
  0x3e   :  { %272 = vperm.xlu1 %1373, %v121_v29   ;;  %267 = vperm.xlu0 %1372, %v120_v30  }
  0x42   :  { %282 = vperm.xlu1 %1373, %v123_v33   ;;  %277 = vperm.xlu0 %1372, %v122_v34  }
  0x81   :  { %v138_v37 = vpop.permute.xlu1 %137  ;;  %v128_v38 = vpop.permute.xlu0 %127 }
  0x82   :  { %v293_v40 = vmul.f32 %v1618_v36, %v138_v37  ;;  %v291_v41 = vmul.f32 %v1618_v36, %v128_v38 }
  0x84   :  { %v332_v42 = vadd.f32 %v1623_v39, %v293_v40  ;;  %v330_v43 = vadd.f32 %v1623_v39, %v291_v41 }
  0x85   :  { %v143_v44 = vpop.permute.xlu1 %142  ;;  %v133_v45 = vpop.permute.xlu0 %132 }
  0x86   :  { %v294_v46 = vmul.f32 %v1618_v36, %v143_v44  ;;  %v292_v47 = vmul.f32 %v1618_v36, %v133_v45  ;;  %v364_v50 = vmax.f32 %v332_v42, 0.0  ;;  %v362_v51 = vmax.f32 %v330_v43, 0.0 }
  0x88   :  { %v333_v48 = vadd.f32 %v1623_v39, %v294_v46  ;;  %v331_v49 = vadd.f32 %v1623_v39, %v292_v47 }
  0x89   :  { %v153_v52 = vpop.permute.xlu1 %152  ;;  %v148_v53 = vpop.permute.xlu0 %147 }
  0x8a   :  { %v365_v54 = vmax.f32 %v333_v48, 0.0  ;;  %v363_v55 = vmax.f32 %v331_v49, 0.0  ;;  %v296_v56 = vmul.f32 %v1618_v36, %v153_v52  ;;  %v295_v57 = vmul.f32 %v1618_v36, %v148_v53 }
  0x8c   :  { %v395_v58 = vpack.c.bf16 %v365_v54, %v364_v50  ;;  %v335_v59 = vadd.f32 %v1623_v39, %v296_v56  ;;  %v334_v60 = vadd.f32 %v1623_v39, %v295_v57  ;;  %v394_v61 = vpack.c.bf16 %v363_v55, %v362_v51 }
  0x8d   :  { %v163_v62 = vpop.permute.xlu1 %162  ;;  %v158_v63 = vpop.permute.xlu0 %157 }
  0x8e   :  { %v367_v0 = vmax.f32 %v335_v59, 0.0  ;;  %v366_v1 = vmax.f32 %v334_v60, 0.0  ;;  %v298_v2 = vmul.f32 %v1618_v36, %v163_v62  ;;  %v297_v3 = vmul.f32 %v1618_v36, %v158_v63  ;;  %1296 = vmatprep.mubr.msk.bf16.mxu0 %vm433_vm0, %v394_v61 }
  0x8f   :  { %1297 = vmatmul.mubr.msk.bf16.vlgmr.msra.gmra.mxu0 %vm433_vm0, %v395_v58 }
  0x90   :  { %v396_v4 = vpack.c.bf16 %v367_v0, %v366_v1  ;;  %v337_v5 = vadd.f32 %v1623_v39, %v298_v2  ;;  %v336_v6 = vadd.f32 %v1623_v39, %v297_v3 }
  0x91   :  { %v173_v7 = vpop.permute.xlu1 %172  ;;  %v168_v8 = vpop.permute.xlu0 %167 }
  0x92   :  { %v369_v9 = vmax.f32 %v337_v5, 0.0  ;;  %v368_v10 = vmax.f32 %v336_v6, 0.0  ;;  %v300_v11 = vmul.f32 %v1618_v36, %v173_v7  ;;  %v299_v12 = vmul.f32 %v1618_v36, %v168_v8  ;;  %1300 = vmatprep.mubr.msk.bf16.mxu0 %vm433_vm0, %v396_v4 }
  0x94   :  { %v397_v13 = vpack.c.bf16 %v369_v9, %v368_v10  ;;  %v339_v14 = vadd.f32 %v1623_v39, %v300_v11  ;;  %v338_v15 = vadd.f32 %v1623_v39, %v299_v12 }
  0x95   :  { %v183_v16 = vpop.permute.xlu1 %182  ;;  %v178_v17 = vpop.permute.xlu0 %177 }
  0x96   :  { %v371_v18 = vmax.f32 %v339_v14, 0.0  ;;  %v370_v19 = vmax.f32 %v338_v15, 0.0  ;;  %v302_v20 = vmul.f32 %v1618_v36, %v183_v16  ;;  %v301_v21 = vmul.f32 %v1618_v36, %v178_v17 }
  0x97   :  { %1301 = vmatmul.mubr.msk.bf16.gmra.mxu0 %vm433_vm0, %v397_v13 }
  0x98   :  { %v398_v22 = vpack.c.bf16 %v371_v18, %v370_v19  ;;  %v341_v23 = vadd.f32 %v1623_v39, %v302_v20  ;;  %v340_v24 = vadd.f32 %v1623_v39, %v301_v21 }
  0x99   :  { %v193_v25 = vpop.permute.xlu1 %192  ;;  %v188_v26 = vpop.permute.xlu0 %187 }
  0x9a   :  { %v373_v27 = vmax.f32 %v341_v23, 0.0  ;;  %v372_v28 = vmax.f32 %v340_v24, 0.0  ;;  %v304_v29 = vmul.f32 %v1618_v36, %v193_v25  ;;  %v303_v30 = vmul.f32 %v1618_v36, %v188_v26  ;;  %1304 = vmatprep.mubr.msk.bf16.mxu0 %vm433_vm0, %v398_v22 }
  0x9c   :  { %v399_v31 = vpack.c.bf16 %v373_v27, %v372_v28  ;;  %v343_v32 = vadd.f32 %v1623_v39, %v304_v29  ;;  %v342_v33 = vadd.f32 %v1623_v39, %v303_v30 }
  0x9d   :  { %v203_v34 = vpop.permute.xlu1 %202  ;;  %v198_v35 = vpop.permute.xlu0 %197 }
  0x9e   :  { %v375_v37 = vmax.f32 %v343_v32, 0.0  ;;  %v374_v38 = vmax.f32 %v342_v33, 0.0  ;;  %v306_v40 = vmul.f32 %v1618_v36, %v203_v34  ;;  %v305_v41 = vmul.f32 %v1618_v36, %v198_v35 }
  0x9f   :  { %1305 = vmatmul.mubr.msk.bf16.gmra.mxu0 %vm433_vm0, %v399_v31 }
  0xa0   :  { %v400_v42 = vpack.c.bf16 %v375_v37, %v374_v38  ;;  %v345_v43 = vadd.f32 %v1623_v39, %v306_v40  ;;  %v344_v44 = vadd.f32 %v1623_v39, %v305_v41 }
  0xa1   :  { %v213_v45 = vpop.permute.xlu1 %212  ;;  %v208_v46 = vpop.permute.xlu0 %207 }
  0xa2   :  { %v377_v47 = vmax.f32 %v345_v43, 0.0  ;;  %v376_v48 = vmax.f32 %v344_v44, 0.0  ;;  %v308_v49 = vmul.f32 %v1618_v36, %v213_v45  ;;  %v307_v50 = vmul.f32 %v1618_v36, %v208_v46  ;;  %1308 = vmatprep.mubr.msk.bf16.mxu0 %vm433_vm0, %v400_v42 }
  0xa4   :  { %v401_v51 = vpack.c.bf16 %v377_v47, %v376_v48  ;;  %v347_v52 = vadd.f32 %v1623_v39, %v308_v49  ;;  %v346_v53 = vadd.f32 %v1623_v39, %v307_v50 }
  0xa5   :  { %v223_v54 = vpop.permute.xlu1 %222  ;;  %v218_v55 = vpop.permute.xlu0 %217 }
  0xa6   :  { %v379_v56 = vmax.f32 %v347_v52, 0.0  ;;  %v378_v57 = vmax.f32 %v346_v53, 0.0  ;;  %v310_v58 = vmul.f32 %v1618_v36, %v223_v54  ;;  %v309_v59 = vmul.f32 %v1618_v36, %v218_v55 }
  0xa7   :  { %1309 = vmatmul.mubr.msk.bf16.gmra.mxu0 %vm433_vm0, %v401_v51 }
  0xa8   :  { %v402_v60 = vpack.c.bf16 %v379_v56, %v378_v57  ;;  %v349_v61 = vadd.f32 %v1623_v39, %v310_v58  ;;  %v348_v62 = vadd.f32 %v1623_v39, %v309_v59  ;;  %v1377_v58 = vld [vmem:[%s1972_s5 + $0x10] sm:$0xff]  }
  0xa9   :  { %v233_v63 = vpop.permute.xlu1 %232  ;;  %v228_v0 = vpop.permute.xlu0 %227  ;;  %1330 = vmatprep.subr.bf16.mxu1 %v1377_v58 }
  0xaa   :  { %v381_v1 = vmax.f32 %v349_v61, 0.0  ;;  %v380_v2 = vmax.f32 %v348_v62, 0.0  ;;  %v312_v3 = vmul.f32 %v1618_v36, %v233_v63  ;;  %v311_v4 = vmul.f32 %v1618_v36, %v228_v0  ;;  %1312 = vmatprep.mubr.msk.bf16.mxu0 %vm433_vm0, %v402_v60  ;;  %1331 = vmatpush3.bf16.msra.mxu1 %v1377_v58  ;;  %v1717_v61 = vld [vmem:[%s1971_s4] ss:$0 sm:$0xff] }
  0xac   :  { %v403_v5 = vpack.c.bf16 %v381_v1, %v380_v2  ;;  %v351_v6 = vadd.f32 %v1623_v39, %v312_v3  ;;  %v350_v7 = vadd.f32 %v1623_v39, %v311_v4 }
  0xad   :  { %v243_v8 = vpop.permute.xlu1 %242  ;;  %v238_v9 = vpop.permute.xlu0 %237 }
  0xae   :  { %v383_v10 = vmax.f32 %v351_v6, 0.0  ;;  %v382_v11 = vmax.f32 %v350_v7, 0.0  ;;  %v314_v12 = vmul.f32 %v1618_v36, %v243_v8  ;;  %v313_v13 = vmul.f32 %v1618_v36, %v238_v9 }
  0xaf   :  { %1313 = vmatmul.mubr.msk.bf16.gmra.mxu0 %vm433_vm0, %v403_v5 }
  0xb0   :  { %v404_v14 = vpack.c.bf16 %v383_v10, %v382_v11  ;;  %v353_v15 = vadd.f32 %v1623_v39, %v314_v12  ;;  %v352_v16 = vadd.f32 %v1623_v39, %v313_v13 }
  0xb1   :  { %v253_v17 = vpop.permute.xlu1 %252  ;;  %v248_v18 = vpop.permute.xlu0 %247 }
  0xb2   :  { %v385_v19 = vmax.f32 %v353_v15, 0.0  ;;  %v384_v20 = vmax.f32 %v352_v16, 0.0  ;;  %v316_v21 = vmul.f32 %v1618_v36, %v253_v17  ;;  %v315_v22 = vmul.f32 %v1618_v36, %v248_v18  ;;  %1316 = vmatprep.mubr.msk.bf16.mxu0 %vm433_vm0, %v404_v14 }
  0xb4   :  { %v405_v23 = vpack.c.bf16 %v385_v19, %v384_v20  ;;  %v355_v24 = vadd.f32 %v1623_v39, %v316_v21  ;;  %v354_v25 = vadd.f32 %v1623_v39, %v315_v22 }
  0xb5   :  { %v263_v26 = vpop.permute.xlu1 %262  ;;  %v258_v27 = vpop.permute.xlu0 %257 }
  0xb6   :  { %v387_v28 = vmax.f32 %v355_v24, 0.0  ;;  %v386_v29 = vmax.f32 %v354_v25, 0.0  ;;  %v318_v30 = vmul.f32 %v1618_v36, %v263_v26  ;;  %v317_v31 = vmul.f32 %v1618_v36, %v258_v27 }
  0xb7   :  { %1317 = vmatmul.mubr.msk.bf16.gmra.mxu0 %vm433_vm0, %v405_v23 }
  0xb8   :  { %v406_v32 = vpack.c.bf16 %v387_v28, %v386_v29  ;;  %v357_v33 = vadd.f32 %v1623_v39, %v318_v30  ;;  %v356_v34 = vadd.f32 %v1623_v39, %v317_v31 }
  0xb9   :  { %v273_v35 = vpop.permute.xlu1 %272  ;;  %v268_v37 = vpop.permute.xlu0 %267 }
  0xba   :  { %v389_v38 = vmax.f32 %v357_v33, 0.0  ;;  %v388_v40 = vmax.f32 %v356_v34, 0.0  ;;  %v320_v41 = vmul.f32 %v1618_v36, %v273_v35  ;;  %v319_v42 = vmul.f32 %v1618_v36, %v268_v37  ;;  %1320 = vmatprep.mubr.msk.bf16.mxu0 %vm433_vm0, %v406_v32 }
  0xbc   :  { %v407_v43 = vpack.c.bf16 %v389_v38, %v388_v40  ;;  %v359_v44 = vadd.f32 %v1623_v39, %v320_v41  ;;  %v358_v45 = vadd.f32 %v1623_v39, %v319_v42 }
  0xbd   :  { %v283_v46 = vpop.permute.xlu1 %282  ;;  %v278_v47 = vpop.permute.xlu0 %277 }
  0xbe   :  { %v391_v48 = vmax.f32 %v359_v44, 0.0  ;;  %v390_v49 = vmax.f32 %v358_v45, 0.0  ;;  %v322_v50 = vmul.f32 %v1618_v36, %v283_v46  ;;  %v321_v51 = vmul.f32 %v1618_v36, %v278_v47  ;;  %v1378_v36 = vld [vmem:[%s1972_s5 + $0x8] sm:$0xff]  }
  0xbf   :  { %1321 = vmatmul.mubr.msk.bf16.gmra.mxu0 %vm433_vm0, %v407_v43  ;;  %1332 = vmatprep.subr.bf16.mxu1 %v1378_v36 }
  0xc0   :  { %v408_v52 = vpack.c.bf16 %v391_v48, %v390_v49  ;;  %v361_v53 = vadd.f32 %v1623_v39, %v322_v50  ;;  %v360_v54 = vadd.f32 %v1623_v39, %v321_v51  ;;  %1333 = vmatpush3.bf16.msra.mxu1 %v1378_v36  ;;  %v1379_v39 = vld [vmem:[%s1972_s5] sm:$0xff]  }
  0xc1   :  { %1334 = vmatprep.subr.bf16.mxu1 %v1379_v39 }
  0xc2   :  { %v393_v55 = vmax.f32 %v361_v53, 0.0  ;;  %v392_v56 = vmax.f32 %v360_v54, 0.0  ;;  %1324 = vmatprep.mubr.msk.bf16.mxu0 %vm433_vm0, %v408_v52 }
  0xc4   :  { %v409_v57 = vpack.c.bf16 %v393_v55, %v392_v56  ;;  %1335 = vmatpush3.bf16.msra.mxu1 %v1379_v39 }
  0xc7   :  { %1325 = vmatmul.mubr.msk.bf16.gmra.mxu0 %vm433_vm0, %v409_v57 }
 0x14f   :  { %v1298_v59 = vpop.f32.mrf.mxu0 }
 0x150   :  { %v525_v1 = vadd.f32 %v1298_v59, %v1717_v61 }
 0x151   :  { %v516_v60 = vpop.f32.mrf.mxu0 }
 0x152   :  { %v517_v63 = vadd.f32 %v1717_v61, %v516_v60  ;;  %v645_v8 = vmax.f32 %v525_v1, 0.0 }
 0x153   :  { %v1299_v62 = vpop.f32.mrf.mxu0 }
 0x154   :  { %v528_v0 = vadd.f32 %v1299_v62, %v1717_v61  ;;  %v643_v6 = vmax.f32 %v517_v63, 0.0 }
 0x155   :  { %v519_v2 = vpop.f32.mrf.mxu0 }
 0x156   :  { %v520_v3 = vadd.f32 %v1717_v61, %v519_v2  ;;  %v646_v4 = vmax.f32 %v528_v0, 0.0 }
 0x157   :  { %v1302_v5 = vpop.f32.mrf.mxu0 }
 0x158   :  { %v644_v7 = vmax.f32 %v520_v3, 0.0  ;;  %v676_v11 = vpack.c.bf16 %v646_v4, %v645_v8  ;;  %v541_v15 = vadd.f32 %v1302_v5, %v1717_v61 }
 0x159   :  { %v532_v9 = vpop.f32.mrf.mxu0 }
 0x15a   :  { %v675_v10 = vpack.c.bf16 %v644_v7, %v643_v6  ;;  %v533_v13 = vadd.f32 %v1717_v61, %v532_v9  ;;  %v649_v22 = vmax.f32 %v541_v15, 0.0 }
 0x15b   :  { %v1303_v12 = vpop.f32.mrf.mxu0 }
 0x15c   :  { %v544_v14 = vadd.f32 %v1303_v12, %v1717_v61  ;;  %1336 = vmatprep.mubr.msk.bf16.mxu1 %vm730_vm1, %v675_v10  ;;  %v647_v20 = vmax.f32 %v533_v13, 0.0 }
 0x15d   :  { %v535_v16 = vpop.f32.mrf.mxu0  ;;  %1337 = vmatmul.mubr.msk.bf16.vlgmr.msra.gmra.mxu1 %vm730_vm1, %v676_v11 }
 0x15e   :  { %v536_v17 = vadd.f32 %v1717_v61, %v535_v16  ;;  %v650_v18 = vmax.f32 %v544_v14, 0.0 }
 0x15f   :  { %v1306_v19 = vpop.f32.mrf.mxu0 }
 0x160   :  { %v648_v21 = vmax.f32 %v536_v17, 0.0  ;;  %v678_v25 = vpack.c.bf16 %v650_v18, %v649_v22  ;;  %v557_v29 = vadd.f32 %v1306_v19, %v1717_v61 }
 0x161   :  { %v548_v23 = vpop.f32.mrf.mxu0 }
 0x162   :  { %v677_v24 = vpack.c.bf16 %v648_v21, %v647_v20  ;;  %v549_v27 = vadd.f32 %v1717_v61, %v548_v23  ;;  %v653_v37 = vmax.f32 %v557_v29, 0.0 }
 0x163   :  { %v1307_v26 = vpop.f32.mrf.mxu0 }
 0x164   :  { %v560_v28 = vadd.f32 %v1307_v26, %v1717_v61  ;;  %1340 = vmatprep.mubr.msk.bf16.mxu1 %vm730_vm1, %v677_v24  ;;  %v651_v34 = vmax.f32 %v549_v27, 0.0 }
 0x165   :  { %v551_v30 = vpop.f32.mrf.mxu0  ;;  %1341 = vmatmul.mubr.msk.bf16.gmra.mxu1 %vm730_vm1, %v678_v25 }
 0x166   :  { %v552_v31 = vadd.f32 %v1717_v61, %v551_v30  ;;  %v654_v32 = vmax.f32 %v560_v28, 0.0 }
 0x167   :  { %v1310_v33 = vpop.f32.mrf.mxu0 }
 0x168   :  { %v652_v35 = vmax.f32 %v552_v31, 0.0  ;;  %v680_v41 = vpack.c.bf16 %v654_v32, %v653_v37  ;;  %v573_v45 = vadd.f32 %v1310_v33, %v1717_v61 }
 0x169   :  { %v564_v38 = vpop.f32.mrf.mxu0 }
 0x16a   :  { %v679_v40 = vpack.c.bf16 %v652_v35, %v651_v34  ;;  %v565_v43 = vadd.f32 %v1717_v61, %v564_v38  ;;  %v657_v52 = vmax.f32 %v573_v45, 0.0 }
 0x16b   :  { %v1311_v42 = vpop.f32.mrf.mxu0 }
 0x16c   :  { %v576_v44 = vadd.f32 %v1311_v42, %v1717_v61  ;;  %1344 = vmatprep.mubr.msk.bf16.mxu1 %vm730_vm1, %v679_v40  ;;  %v655_v50 = vmax.f32 %v565_v43, 0.0 }
 0x16d   :  { %v567_v46 = vpop.f32.mrf.mxu0  ;;  %1345 = vmatmul.mubr.msk.bf16.gmra.mxu1 %vm730_vm1, %v680_v41 }
 0x16e   :  { %v568_v47 = vadd.f32 %v1717_v61, %v567_v46  ;;  %v658_v48 = vmax.f32 %v576_v44, 0.0 }
 0x16f   :  { %v1314_v49 = vpop.f32.mrf.mxu0 }
 0x170   :  { %v656_v51 = vmax.f32 %v568_v47, 0.0  ;;  %v682_v55 = vpack.c.bf16 %v658_v48, %v657_v52  ;;  %v589_v36 = vadd.f32 %v1314_v49, %v1717_v61  ;;  %v1770_v47 = vld [vmem:[%s1973_s6] ss:$0 sm:$0xff]  ;;  %s1467_s6 = smov [#allocation2]  }
 0x171   :  { %v580_v53 = vpop.f32.mrf.mxu0  ;;  %s1201_s9 = sshll.u32 %s1467_s6, 4  ;;  %s1202_s9 = int_to_ptr.vmem [resolvable:$true] %s1201_s9 }
 0x172   :  { %v681_v54 = vpack.c.bf16 %v656_v51, %v655_v50  ;;  %v581_v57 = vadd.f32 %v1717_v61, %v580_v53  ;;  %v661_v1 = vmax.f32 %v589_v36, 0.0  ;;  %s1444_s10 = scalar_lea.vmem %s1202_s9, 4096  ;;  %p1449_p1 = scmp.lt.s32.totalorder %s1202_s9, %s1202_s9 }
 0x173   :  { %v1315_v56 = vpop.f32.mrf.mxu0  ;;  %p1445_p0 = scmp.ne.s32.totalorder %s1202_s9, %s1444_s10  ;;  %p1450_p2 = scmp.lt.s32.totalorder %s1444_s10, %s1444_s10 }
 0x174   :  { %v592_v58 = vadd.f32 %v1315_v56, %v1717_v61  ;;  %1348 = vmatprep.mubr.msk.bf16.mxu1 %vm730_vm1, %v681_v54  ;;  %v659_v63 = vmax.f32 %v581_v57, 0.0 }
 0x175   :  { %v583_v39 = vpop.f32.mrf.mxu0  ;;  %1349 = vmatmul.mubr.msk.bf16.gmra.mxu1 %vm730_vm1, %v682_v55  ;;  %p1451_p3 = por %p1450_p2, %p1449_p1 }
 0x176   :  { %v584_v59 = vadd.f32 %v1717_v61, %v583_v39  ;;  %v662_v60 = vmax.f32 %v592_v58, 0.0 }
 0x177   :  { %v1318_v62 = vpop.f32.mrf.mxu0  ;;  %p1452_p4 = pnand %p1451_p3, %p1445_p0 }
 0x178   :  { %v660_v0 = vmax.f32 %v584_v59, 0.0  ;;  %v684_v4 = vpack.c.bf16 %v662_v60, %v661_v1  ;;  %v605_v8 = vadd.f32 %v1318_v62, %v1717_v61 }
 0x179   :  { %v596_v2 = vpop.f32.mrf.mxu0 }
 0x17a   :  { %v683_v3 = vpack.c.bf16 %v660_v0, %v659_v63  ;;  %v597_v6 = vadd.f32 %v1717_v61, %v596_v2  ;;  %v665_v15 = vmax.f32 %v605_v8, 0.0 }
 0x17b   :  { %v1319_v5 = vpop.f32.mrf.mxu0 }
 0x17c   :  { %v608_v7 = vadd.f32 %v1319_v5, %v1717_v61  ;;  %1352 = vmatprep.mubr.msk.bf16.mxu1 %vm730_vm1, %v683_v3  ;;  %v663_v13 = vmax.f32 %v597_v6, 0.0 }
 0x17d   :  { %v599_v9 = vpop.f32.mrf.mxu0  ;;  %1353 = vmatmul.mubr.msk.bf16.gmra.mxu1 %vm730_vm1, %v684_v4 }
 0x17e   :  { %v600_v10 = vadd.f32 %v1717_v61, %v599_v9  ;;  %v666_v11 = vmax.f32 %v608_v7, 0.0 }
 0x17f   :  { %v1322_v12 = vpop.f32.mrf.mxu0 }
 0x180   :  { %v664_v14 = vmax.f32 %v600_v10, 0.0  ;;  %v686_v18 = vpack.c.bf16 %v666_v11, %v665_v15  ;;  %v621_v22 = vadd.f32 %v1322_v12, %v1717_v61 }
 0x181   :  { %v612_v16 = vpop.f32.mrf.mxu0 }
 0x182   :  { %v685_v17 = vpack.c.bf16 %v664_v14, %v663_v13  ;;  %v613_v20 = vadd.f32 %v1717_v61, %v612_v16  ;;  %v669_v29 = vmax.f32 %v621_v22, 0.0 }
 0x183   :  { %v1323_v19 = vpop.f32.mrf.mxu0 }
 0x184   :  { %v624_v21 = vadd.f32 %v1323_v19, %v1717_v61  ;;  %1356 = vmatprep.mubr.msk.bf16.mxu1 %vm730_vm1, %v685_v17  ;;  %v667_v27 = vmax.f32 %v613_v20, 0.0 }
 0x185   :  { %v615_v23 = vpop.f32.mrf.mxu0  ;;  %1357 = vmatmul.mubr.msk.bf16.gmra.mxu1 %vm730_vm1, %v686_v18 }
 0x186   :  { %v616_v24 = vadd.f32 %v1717_v61, %v615_v23  ;;  %v670_v25 = vmax.f32 %v624_v21, 0.0 }
 0x187   :  { %v1326_v26 = vpop.f32.mrf.mxu0 }
 0x188   :  { %v668_v28 = vmax.f32 %v616_v24, 0.0  ;;  %v688_v32 = vpack.c.bf16 %v670_v25, %v669_v29  ;;  %v637_v37 = vadd.f32 %v1326_v26, %v1717_v61 }
 0x189   :  { %v628_v30 = vpop.f32.mrf.mxu0 }
 0x18a   :  { %v687_v31 = vpack.c.bf16 %v668_v28, %v667_v27  ;;  %v629_v34 = vadd.f32 %v1717_v61, %v628_v30  ;;  %v673_v44 = vmax.f32 %v637_v37, 0.0 }
 0x18b   :  { %v1327_v33 = vpop.f32.mrf.mxu0 }
 0x18c   :  { %v640_v35 = vadd.f32 %v1327_v33, %v1717_v61  ;;  %1360 = vmatprep.mubr.msk.bf16.mxu1 %vm730_vm1, %v687_v31  ;;  %v671_v42 = vmax.f32 %v629_v34, 0.0 }
 0x18d   :  { %v631_v38 = vpop.f32.mrf.mxu0  ;;  %1361 = vmatmul.mubr.msk.bf16.gmra.mxu1 %vm730_vm1, %v688_v32 }
 0x18e   :  { %v632_v40 = vadd.f32 %v1717_v61, %v631_v38  ;;  %v674_v41 = vmax.f32 %v640_v35, 0.0 }
 0x190   :  { %v672_v43 = vmax.f32 %v632_v40, 0.0  ;;  %v690_v46 = vpack.c.bf16 %v674_v41, %v673_v44 }
 0x192   :  { %v689_v45 = vpack.c.bf16 %v672_v43, %v671_v42 }
 0x194   :  { %1364 = vmatprep.mubr.msk.bf16.mxu1 %vm730_vm1, %v689_v45 }
 0x195   :  { %1365 = vmatmul.mubr.msk.bf16.gmra.mxu1 %vm730_vm1, %v690_v46 }
 0x21d   :  { %v1338_v48 = vpop.f32.mrf.mxu1 }
 0x21e   :  { %v1773_v49 = vadd.f32 %v1338_v48, %v1770_v47 }
 0x21f   :  { %v813_v61 = vpop.f32.mrf.mxu1 }
 0x220   :  { %v1776_v50 = vadd.f32 %v1770_v47, %v813_v61  ;;  %v942_v51 = vmul.f32 %v1773_v49, %v1773_v49 }
 0x221   :  { %v1339_v52 = vpop.f32.mrf.mxu1 }
 0x222   :  { %976 = vadd.xlane.f32.xlu0 %v942_v51  ;;  %v1781_v54 = vadd.f32 %v1339_v52, %v1770_v47  ;;  %v940_v56 = vmul.f32 %v1776_v50, %v1776_v50 }
 0x223   :  { %v816_v53 = vpop.f32.mrf.mxu1 }
 0x224   :  { %v1784_v55 = vadd.f32 %v1770_v47, %v816_v53  ;;  %v943_v59 = vmul.f32 %v1781_v54, %v1781_v54 }
 0x225   :  { %v1342_v57 = vpop.f32.mrf.mxu1 }
 0x226   :  { %v1789_v58 = vadd.f32 %v1342_v57, %v1770_v47  ;;  %972 = vadd.xlane.f32.xlu0 %v940_v56  ;;  %v941_v36 = vmul.f32 %v1784_v55, %v1784_v55 }
 0x227   :  { %v829_v39 = vpop.f32.mrf.mxu1 }
 0x228   :  { %974 = vadd.xlane.f32.xlu1 %v941_v36  ;;  %v1796_v62 = vadd.f32 %v1770_v47, %v829_v39  ;;  %v946_v0 = vmul.f32 %v1789_v58, %v1789_v58 }
 0x229   :  { %v1343_v60 = vpop.f32.mrf.mxu1 }
 0x22a   :  { %v1799_v63 = vadd.f32 %v1343_v60, %v1770_v47  ;;  %978 = vadd.xlane.f32.xlu0 %v943_v59  ;;  %v944_v6 = vmul.f32 %v1796_v62, %v1796_v62 }
 0x22b   :  { %v832_v1 = vpop.f32.mrf.mxu1 }
 0x22c   :  { %v1804_v2 = vadd.f32 %v1770_v47, %v832_v1  ;;  %984 = vadd.xlane.f32.xlu1 %v946_v0  ;;  %v947_v3 = vmul.f32 %v1799_v63, %v1799_v63 }
 0x22d   :  { %v1346_v4 = vpop.f32.mrf.mxu1 }
 0x22e   :  { %v1809_v5 = vadd.f32 %v1346_v4, %v1770_v47  ;;  %986 = vadd.xlane.f32.xlu0 %v947_v3  ;;  %v945_v8 = vmul.f32 %v1804_v2, %v1804_v2 }
 0x22f   :  { %v845_v7 = vpop.f32.mrf.mxu1 }
 0x230   :  { %980 = vadd.xlane.f32.xlu1 %v944_v6  ;;  %v1816_v10 = vadd.f32 %v1770_v47, %v845_v7  ;;  %v950_v12 = vmul.f32 %v1809_v5, %v1809_v5 }
 0x231   :  { %v1347_v9 = vpop.f32.mrf.mxu1 }
 0x232   :  { %v1819_v11 = vadd.f32 %v1347_v9, %v1770_v47  ;;  %982 = vadd.xlane.f32.xlu0 %v945_v8  ;;  %v948_v18 = vmul.f32 %v1816_v10, %v1816_v10 }
 0x233   :  { %v848_v13 = vpop.f32.mrf.mxu1 }
 0x234   :  { %v1824_v14 = vadd.f32 %v1770_v47, %v848_v13  ;;  %992 = vadd.xlane.f32.xlu1 %v950_v12  ;;  %v951_v15 = vmul.f32 %v1819_v11, %v1819_v11 }
 0x235   :  { %v1350_v16 = vpop.f32.mrf.mxu1 }
 0x236   :  { %v1829_v17 = vadd.f32 %v1350_v16, %v1770_v47  ;;  %994 = vadd.xlane.f32.xlu0 %v951_v15  ;;  %v949_v20 = vmul.f32 %v1824_v14, %v1824_v14 }
 0x237   :  { %v861_v19 = vpop.f32.mrf.mxu1 }
 0x238   :  { %988 = vadd.xlane.f32.xlu1 %v948_v18  ;;  %v1836_v22 = vadd.f32 %v1770_v47, %v861_v19  ;;  %v954_v24 = vmul.f32 %v1829_v17, %v1829_v17 }
 0x239   :  { %v1351_v21 = vpop.f32.mrf.mxu1 }
 0x23a   :  { %v1839_v23 = vadd.f32 %v1351_v21, %v1770_v47  ;;  %990 = vadd.xlane.f32.xlu0 %v949_v20  ;;  %v952_v30 = vmul.f32 %v1836_v22, %v1836_v22 }
 0x23b   :  { %v864_v25 = vpop.f32.mrf.mxu1 }
 0x23c   :  { %v1844_v26 = vadd.f32 %v1770_v47, %v864_v25  ;;  %1000 = vadd.xlane.f32.xlu1 %v954_v24  ;;  %v955_v27 = vmul.f32 %v1839_v23, %v1839_v23 }
 0x23d   :  { %v1354_v28 = vpop.f32.mrf.mxu1 }
 0x23e   :  { %v1849_v29 = vadd.f32 %v1354_v28, %v1770_v47  ;;  %1002 = vadd.xlane.f32.xlu0 %v955_v27  ;;  %v953_v32 = vmul.f32 %v1844_v26, %v1844_v26 }
 0x23f   :  { %v877_v31 = vpop.f32.mrf.mxu1 }
 0x240   :  { %996 = vadd.xlane.f32.xlu1 %v952_v30  ;;  %v1856_v34 = vadd.f32 %v1770_v47, %v877_v31  ;;  %v958_v37 = vmul.f32 %v1849_v29, %v1849_v29 }
 0x241   :  { %v1355_v33 = vpop.f32.mrf.mxu1 }
 0x242   :  { %v1859_v35 = vadd.f32 %v1355_v33, %v1770_v47  ;;  %998 = vadd.xlane.f32.xlu0 %v953_v32  ;;  %v956_v44 = vmul.f32 %v1856_v34, %v1856_v34 }
 0x243   :  { %v880_v38 = vpop.f32.mrf.mxu1 }
 0x244   :  { %v1864_v40 = vadd.f32 %v1770_v47, %v880_v38  ;;  %1008 = vadd.xlane.f32.xlu1 %v958_v37  ;;  %v959_v41 = vmul.f32 %v1859_v35, %v1859_v35 }
 0x245   :  { %v1358_v42 = vpop.f32.mrf.mxu1 }
 0x246   :  { %v1869_v43 = vadd.f32 %v1358_v42, %v1770_v47  ;;  %1010 = vadd.xlane.f32.xlu0 %v959_v41  ;;  %v957_v46 = vmul.f32 %v1864_v40, %v1864_v40 }
 0x247   :  { %v893_v45 = vpop.f32.mrf.mxu1 }
 0x248   :  { %1004 = vadd.xlane.f32.xlu1 %v956_v44  ;;  %v1876_v61 = vadd.f32 %v1770_v47, %v893_v45  ;;  %v962_v52 = vmul.f32 %v1869_v43, %v1869_v43 }
 0x249   :  { %v1359_v48 = vpop.f32.mrf.mxu1 }
 0x24a   :  { %v1879_v51 = vadd.f32 %v1359_v48, %v1770_v47  ;;  %1006 = vadd.xlane.f32.xlu0 %v957_v46  ;;  %v960_v59 = vmul.f32 %v1876_v61, %v1876_v61 }
 0x24b   :  { %v896_v53 = vpop.f32.mrf.mxu1 }
 0x24c   :  { %v1884_v56 = vadd.f32 %v1770_v47, %v896_v53  ;;  %1016 = vadd.xlane.f32.xlu1 %v962_v52  ;;  %v963_v57 = vmul.f32 %v1879_v51, %v1879_v51 }
 0x24d   :  { %v1362_v36 = vpop.f32.mrf.mxu1 }
 0x24e   :  { %v1889_v39 = vadd.f32 %v1362_v36, %v1770_v47  ;;  %1018 = vadd.xlane.f32.xlu0 %v963_v57  ;;  %v961_v0 = vmul.f32 %v1884_v56, %v1884_v56 }
 0x24f   :  { %v909_v60 = vpop.f32.mrf.mxu1 }
 0x250   :  { %1012 = vadd.xlane.f32.xlu1 %v960_v59  ;;  %v1896_v3 = vadd.f32 %v1770_v47, %v909_v60  ;;  %v966_v6 = vmul.f32 %v1889_v39, %v1889_v39 }
 0x251   :  { %v1363_v1 = vpop.f32.mrf.mxu1 }
 0x252   :  { %v1899_v4 = vadd.f32 %v1363_v1, %v1770_v47  ;;  %1014 = vadd.xlane.f32.xlu0 %v961_v0  ;;  %v964_v13 = vmul.f32 %v1896_v3, %v1896_v3 }
 0x253   :  { %v912_v7 = vpop.f32.mrf.mxu1 }
 0x254   :  { %v1904_v8 = vadd.f32 %v1770_v47, %v912_v7  ;;  %1024 = vadd.xlane.f32.xlu1 %v966_v6  ;;  %v967_v9 = vmul.f32 %v1899_v4, %v1899_v4 }
 0x255   :  { %v1366_v12 = vpop.f32.mrf.mxu1 }
 0x256   :  { %1026 = vadd.xlane.f32.xlu0 %v967_v9  ;;  %v965_v18 = vmul.f32 %v1904_v8, %v1904_v8  ;;  %v1916_v20 = vadd.f32 %v1366_v12, %v1770_v47 }
 0x257   :  { %v925_v15 = vpop.f32.mrf.mxu1 }
 0x258   :  { %v1911_v16 = vadd.f32 %v1770_v47, %v925_v15  ;;  %1020 = vadd.xlane.f32.xlu1 %v964_v13  ;;  %v970_v30 = vmul.f32 %v1916_v20, %v1916_v20 }
 0x259   :  { %v1367_v19 = vpop.f32.mrf.mxu1 }
 0x25a   :  { %1022 = vadd.xlane.f32.xlu0 %v965_v18  ;;  %v968_v21 = vmul.f32 %v1911_v16, %v1911_v16  ;;  %v1924_v27 = vadd.f32 %v1367_v19, %v1770_v47 }
 0x25b   :  { %v928_v24 = vpop.f32.mrf.mxu1 }
 0x25c   :  { %v1921_v25 = vadd.f32 %v1770_v47, %v928_v24  ;;  %1028 = vadd.xlane.f32.xlu1 %v968_v21  ;;  %v971_v31 = vmul.f32 %v1924_v27, %v1924_v27 }
 0x25e   :  { %v969_v28 = vmul.f32 %v1921_v25, %v1921_v25 }
 0x260   :  { %1030 = vadd.xlane.f32.xlu0 %v969_v28  ;;  %1032 = vadd.xlane.f32.xlu1 %v970_v30 }
 0x264   :  { %1034 = vadd.xlane.f32.xlu0 %v971_v31 }
 0x2ab   :  { %v977_v32 = vpop.xlane.xlu0 %976 }
 0x2ac   :  { %v1038_v33 = vmax.f32 %v977_v32, 1e-24 }
 0x2ae   :  { %1380 = vrsqrt.f32 %v1038_v33 }
 0x2af   :  { %v973_v37 = vpop.xlane.xlu0 %972 }
 0x2b0   :  { %v1036_v38 = vmax.f32 %v973_v37, 1e-24 }
 0x2b1   :  { %v975_v41 = vpop.xlane.xlu1 %974 }
 0x2b2   :  { %1382 = vrsqrt.f32 %v1036_v38  ;;  %v1037_v47 = vmax.f32 %v975_v41, 1e-24 }
 0x2b3   :  { %v979_v42 = vpop.xlane.xlu0 %978 }
 0x2b4   :  { %1384 = vrsqrt.f32 %v1037_v47  ;;  %v1039_v44 = vmax.f32 %v979_v42, 1e-24 }
 0x2b5   :  { %v985_v45 = vpop.xlane.xlu1 %984 }
 0x2b6   :  { %1386 = vrsqrt.f32 %v1039_v44  ;;  %v1042_v46 = vmax.f32 %v985_v45, 1e-24 }
 0x2b7   :  { %v987_v48 = vpop.xlane.xlu0 %986 }
 0x2b8   :  { %1388 = vrsqrt.f32 %v1042_v46  ;;  %v1043_v52 = vmax.f32 %v987_v48, 1e-24 }
 0x2b9   :  { %v981_v53 = vpop.xlane.xlu1 %980 }
 0x2ba   :  { %1390 = vrsqrt.f32 %v1043_v52  ;;  %v1040_v57 = vmax.f32 %v981_v53, 1e-24 }
 0x2bb   :  { %v1381_v36 = vpop.eup %1380  ;;  %v983_v59 = vpop.xlane.xlu0 %982 }
 0x2bc   :  { %v1102_v60 = vmul.f32 %v1381_v36, %v1773_v49  ;;  %1392 = vrsqrt.f32 %v1040_v57  ;;  %v1041_v0 = vmax.f32 %v983_v59, 1e-24 }
 0x2bd   :  { %v993_v1 = vpop.xlane.xlu1 %992 }
 0x2be   :  { %v1134_v6 = vmax.f32 %v1102_v60, 0.0  ;;  %1394 = vrsqrt.f32 %v1041_v0  ;;  %v1046_v7 = vmax.f32 %v993_v1, 1e-24 }
 0x2bf   :  { %v1383_v9 = vpop.eup %1382  ;;  %v995_v12 = vpop.xlane.xlu0 %994 }
 0x2c0   :  { %1166 = vst [vmem:[#allocation2 + $0x10] sm:$0xff] %v1134_v6  ;;  %v1100_v13 = vmul.f32 %v1383_v9, %v1776_v50  ;;  %1396 = vrsqrt.f32 %v1046_v7  ;;  %v1047_v15 = vmax.f32 %v995_v12, 1e-24 }
 0x2c1   :  { %v1385_v18 = vpop.eup %1384  ;;  %v989_v19 = vpop.xlane.xlu1 %988 }
 0x2c2   :  { %v1132_v21 = vmax.f32 %v1100_v13, 0.0  ;;  %v1101_v24 = vmul.f32 %v1385_v18, %v1784_v55  ;;  %1398 = vrsqrt.f32 %v1047_v15  ;;  %v1044_v49 = vmax.f32 %v989_v19, 1e-24 }
 0x2c3   :  { %v1387_v28 = vpop.eup %1386  ;;  %v991_v30 = vpop.xlane.xlu0 %990 }
 0x2c4   :  { %1164 = vst [vmem:[#allocation2] sm:$0xff] %v1132_v21  ;;  %v1133_v31 = vmax.f32 %v1101_v24, 0.0  ;;  %v1103_v32 = vmul.f32 %v1387_v28, %v1781_v54  ;;  %1400 = vrsqrt.f32 %v1044_v49  ;;  %v1045_v33 = vmax.f32 %v991_v30, 1e-24 }
 0x2c5   :  { %v1389_v37 = vpop.eup %1388  ;;  %v1001_v38 = vpop.xlane.xlu1 %1000 }
 0x2c6   :  { %1165 = vst [vmem:[#allocation2 + $0x8] sm:$0xff] %v1133_v31  ;;  %v1135_v50 = vmax.f32 %v1103_v32, 0.0  ;;  %v1106_v41 = vmul.f32 %v1389_v37, %v1789_v58  ;;  %1402 = vrsqrt.f32 %v1045_v33  ;;  %v1050_v47 = vmax.f32 %v1001_v38, 1e-24 }
 0x2c7   :  { %v1391_v42 = vpop.eup %1390  ;;  %v1003_v55 = vpop.xlane.xlu0 %1002 }
 0x2c8   :  { %1167 = vst [vmem:[#allocation2 + $0x18] sm:$0xff] %v1135_v50  ;;  %v1138_v44 = vmax.f32 %v1106_v41, 0.0  ;;  %v1107_v45 = vmul.f32 %v1391_v42, %v1799_v63  ;;  %1404 = vrsqrt.f32 %v1050_v47  ;;  %v1051_v46 = vmax.f32 %v1003_v55, 1e-24 }
 0x2c9   :  { %v1393_v48 = vpop.eup %1392  ;;  %v997_v54 = vpop.xlane.xlu1 %996 }
 0x2ca   :  { %1170 = vst [vmem:[#allocation2 + $0x30] sm:$0xff] %v1138_v44  ;;  %v1139_v52 = vmax.f32 %v1107_v45, 0.0  ;;  %v1104_v53 = vmul.f32 %v1393_v48, %v1796_v62  ;;  %1406 = vrsqrt.f32 %v1051_v46  ;;  %v1048_v57 = vmax.f32 %v997_v54, 1e-24 }
 0x2cb   :  { %v1395_v36 = vpop.eup %1394  ;;  %v999_v58 = vpop.xlane.xlu0 %998 }
 0x2cc   :  { %1171 = vst [vmem:[#allocation2 + $0x38] sm:$0xff] %v1139_v52  ;;  %v1136_v59 = vmax.f32 %v1104_v53, 0.0  ;;  %v1105_v60 = vmul.f32 %v1395_v36, %v1804_v2  ;;  %1408 = vrsqrt.f32 %v1048_v57  ;;  %v1049_v0 = vmax.f32 %v999_v58, 1e-24 }
 0x2cd   :  { %v1397_v1 = vpop.eup %1396  ;;  %v1009_v63 = vpop.xlane.xlu1 %1008 }
 0x2ce   :  { %1168 = vst [vmem:[#allocation2 + $0x20] sm:$0xff] %v1136_v59  ;;  %v1137_v6 = vmax.f32 %v1105_v60, 0.0  ;;  %v1110_v7 = vmul.f32 %v1397_v1, %v1809_v5  ;;  %1410 = vrsqrt.f32 %v1049_v0  ;;  %v1054_v9 = vmax.f32 %v1009_v63, 1e-24 }
 0x2cf   :  { %v1399_v12 = vpop.eup %1398  ;;  %v1011_v62 = vpop.xlane.xlu0 %1010 }
 0x2d0   :  { %1169 = vst [vmem:[#allocation2 + $0x28] sm:$0xff] %v1137_v6  ;;  %v1142_v13 = vmax.f32 %v1110_v7, 0.0  ;;  %v1111_v15 = vmul.f32 %v1399_v12, %v1819_v11  ;;  %1412 = vrsqrt.f32 %v1054_v9  ;;  %v1055_v18 = vmax.f32 %v1011_v62, 1e-24 }
 0x2d1   :  { %v1401_v19 = vpop.eup %1400  ;;  %v1005_v2 = vpop.xlane.xlu1 %1004 }
 0x2d2   :  { %1174 = vst [vmem:[#allocation2 + $0x50] sm:$0xff] %v1142_v13  ;;  %v1143_v21 = vmax.f32 %v1111_v15, 0.0  ;;  %v1108_v24 = vmul.f32 %v1401_v19, %v1816_v10  ;;  %1414 = vrsqrt.f32 %v1055_v18  ;;  %v1052_v49 = vmax.f32 %v1005_v2, 1e-24 }
 0x2d3   :  { %v1403_v28 = vpop.eup %1402  ;;  %v1007_v5 = vpop.xlane.xlu0 %1006 }
 0x2d4   :  { %1175 = vst [vmem:[#allocation2 + $0x58] sm:$0xff] %v1143_v21  ;;  %v1140_v30 = vmax.f32 %v1108_v24, 0.0  ;;  %v1109_v31 = vmul.f32 %v1403_v28, %v1824_v14  ;;  %1416 = vrsqrt.f32 %v1052_v49  ;;  %v1053_v32 = vmax.f32 %v1007_v5, 1e-24 }
 0x2d5   :  { %v1405_v33 = vpop.eup %1404  ;;  %v1017_v11 = vpop.xlane.xlu1 %1016 }
 0x2d6   :  { %1172 = vst [vmem:[#allocation2 + $0x40] sm:$0xff] %v1140_v30  ;;  %v1141_v37 = vmax.f32 %v1109_v31, 0.0  ;;  %v1114_v38 = vmul.f32 %v1405_v33, %v1829_v17  ;;  %1418 = vrsqrt.f32 %v1053_v32  ;;  %v1058_v50 = vmax.f32 %v1017_v11, 1e-24 }
 0x2d7   :  { %v1407_v41 = vpop.eup %1406  ;;  %v1019_v10 = vpop.xlane.xlu0 %1018 }
 0x2d8   :  { %1173 = vst [vmem:[#allocation2 + $0x48] sm:$0xff] %v1141_v37  ;;  %v1146_v47 = vmax.f32 %v1114_v38, 0.0  ;;  %v1115_v42 = vmul.f32 %v1407_v41, %v1839_v23  ;;  %1420 = vrsqrt.f32 %v1058_v50  ;;  %v1059_v55 = vmax.f32 %v1019_v10, 1e-24 }
 0x2d9   :  { %v1409_v44 = vpop.eup %1408  ;;  %v1013_v14 = vpop.xlane.xlu1 %1012 }
 0x2da   :  { %1178 = vst [vmem:[#allocation2 + $0x70] sm:$0xff] %v1146_v47  ;;  %v1147_v45 = vmax.f32 %v1115_v42, 0.0  ;;  %v1112_v46 = vmul.f32 %v1409_v44, %v1836_v22  ;;  %1422 = vrsqrt.f32 %v1059_v55  ;;  %v1056_v48 = vmax.f32 %v1013_v14, 1e-24 }
 0x2db   :  { %v1411_v54 = vpop.eup %1410  ;;  %v1015_v17 = vpop.xlane.xlu0 %1014 }
 0x2dc   :  { %1179 = vst [vmem:[#allocation2 + $0x78] sm:$0xff] %v1147_v45  ;;  %v1144_v52 = vmax.f32 %v1112_v46, 0.0  ;;  %v1113_v53 = vmul.f32 %v1411_v54, %v1844_v26  ;;  %1424 = vrsqrt.f32 %v1056_v48  ;;  %v1057_v57 = vmax.f32 %v1015_v17, 1e-24 }
 0x2dd   :  { %v1413_v36 = vpop.eup %1412  ;;  %v1025_v23 = vpop.xlane.xlu1 %1024 }
 0x2de   :  { %1176 = vst [vmem:[#allocation2 + $0x60] sm:$0xff] %v1144_v52  ;;  %v1145_v58 = vmax.f32 %v1113_v53, 0.0  ;;  %v1118_v59 = vmul.f32 %v1413_v36, %v1849_v29  ;;  %1426 = vrsqrt.f32 %v1057_v57  ;;  %v1062_v60 = vmax.f32 %v1025_v23, 1e-24 }
 0x2df   :  { %v1415_v0 = vpop.eup %1414  ;;  %v1027_v22 = vpop.xlane.xlu0 %1026 }
 0x2e0   :  { %1177 = vst [vmem:[#allocation2 + $0x68] sm:$0xff] %v1145_v58  ;;  %v1150_v1 = vmax.f32 %v1118_v59, 0.0  ;;  %v1119_v63 = vmul.f32 %v1415_v0, %v1859_v35  ;;  %1428 = vrsqrt.f32 %v1062_v60  ;;  %v1063_v6 = vmax.f32 %v1027_v22, 1e-24 }
 0x2e1   :  { %v1417_v7 = vpop.eup %1416  ;;  %v1021_v26 = vpop.xlane.xlu1 %1020 }
 0x2e2   :  { %1182 = vst [vmem:[#allocation2 + $0x90] sm:$0xff] %v1150_v1  ;;  %v1151_v9 = vmax.f32 %v1119_v63, 0.0  ;;  %v1116_v12 = vmul.f32 %v1417_v7, %v1856_v34  ;;  %1430 = vrsqrt.f32 %v1063_v6  ;;  %v1060_v62 = vmax.f32 %v1021_v26, 1e-24 }
 0x2e3   :  { %v1419_v13 = vpop.eup %1418  ;;  %v1023_v29 = vpop.xlane.xlu0 %1022 }
 0x2e4   :  { %1183 = vst [vmem:[#allocation2 + $0x98] sm:$0xff] %v1151_v9  ;;  %v1148_v15 = vmax.f32 %v1116_v12, 0.0  ;;  %v1117_v18 = vmul.f32 %v1419_v13, %v1864_v40  ;;  %1432 = vrsqrt.f32 %v1060_v62  ;;  %v1061_v19 = vmax.f32 %v1023_v29, 1e-24 }
 0x2e5   :  { %v1421_v2 = vpop.eup %1420  ;;  %v1029_v35 = vpop.xlane.xlu1 %1028 }
 0x2e6   :  { %1180 = vst [vmem:[#allocation2 + $0x80] sm:$0xff] %v1148_v15  ;;  %v1149_v21 = vmax.f32 %v1117_v18, 0.0  ;;  %v1122_v24 = vmul.f32 %v1421_v2, %v1869_v43  ;;  %1434 = vrsqrt.f32 %v1061_v19  ;;  %v1064_v49 = vmax.f32 %v1029_v35, 1e-24 }
 0x2e7   :  { %v1423_v28 = vpop.eup %1422 }
 0x2e8   :  { %1181 = vst [vmem:[#allocation2 + $0x88] sm:$0xff] %v1149_v21  ;;  %v1154_v34 = vmax.f32 %v1122_v24, 0.0  ;;  %v1123_v5 = vmul.f32 %v1423_v28, %v1879_v51  ;;  %1436 = vrsqrt.f32 %v1064_v49 }
 0x2e9   :  { %v1425_v30 = vpop.eup %1424  ;;  %v1033_v31 = vpop.xlane.xlu1 %1032 }
 0x2ea   :  { %v1031_v32 = vpop.xlane.xlu0 %1030  ;;  %1186 = vst [vmem:[#allocation2 + $0xb0] sm:$0xff] %v1154_v34  ;;  %v1155_v40 = vmax.f32 %v1123_v5, 0.0  ;;  %v1120_v33 = vmul.f32 %v1425_v30, %v1876_v61  ;;  %v1066_v11 = vmax.f32 %v1033_v31, 1e-24 }
 0x2eb   :  { %v1065_v37 = vmax.f32 %v1031_v32, 1e-24  ;;  %v1427_v38 = vpop.eup %1426 }
 0x2ec   :  { %1187 = vst [vmem:[#allocation2 + $0xb8] sm:$0xff] %v1155_v40  ;;  %v1152_v43 = vmax.f32 %v1120_v33, 0.0  ;;  %v1121_v50 = vmul.f32 %v1427_v38, %v1884_v56  ;;  %1438 = vrsqrt.f32 %v1066_v11 }
 0x2ed   :  { %v1429_v41 = vpop.eup %1428  ;;  %1440 = vrsqrt.f32 %v1065_v37 }
 0x2ee   :  { %v1035_v10 = vpop.xlane.xlu0 %1034  ;;  %1184 = vst [vmem:[#allocation2 + $0xa0] sm:$0xff] %v1152_v43  ;;  %v1153_v51 = vmax.f32 %v1121_v50, 0.0  ;;  %v1126_v47 = vmul.f32 %v1429_v41, %v1889_v39 }
 0x2ef   :  { %v1067_v42 = vmax.f32 %v1035_v10, 1e-24  ;;  %v1431_v55 = vpop.eup %1430 }
 0x2f0   :  { %1185 = vst [vmem:[#allocation2 + $0xa8] sm:$0xff] %v1153_v51  ;;  %v1158_v44 = vmax.f32 %v1126_v47, 0.0  ;;  %v1127_v61 = vmul.f32 %v1431_v55, %v1899_v4 }
 0x2f1   :  { %1442 = vrsqrt.f32 %v1067_v42  ;;  %v1433_v14 = vpop.eup %1432 }
 0x2f2   :  { %1190 = vst [vmem:[#allocation2 + $0xd0] sm:$0xff] %v1158_v44  ;;  %v1159_v45 = vmax.f32 %v1127_v61, 0.0  ;;  %v1124_v56 = vmul.f32 %v1433_v14, %v1896_v3 }
 0x2f3   :  { %v1435_v46 = vpop.eup %1434 }
 0x2f4   :  { %1191 = vst [vmem:[#allocation2 + $0xd8] sm:$0xff] %v1159_v45  ;;  %v1156_v48 = vmax.f32 %v1124_v56, 0.0  ;;  %v1125_v54 = vmul.f32 %v1435_v46, %v1904_v8 }
 0x2f5   :  { %v1437_v17 = vpop.eup %1436 }
 0x2f6   :  { %1188 = vst [vmem:[#allocation2 + $0xc0] sm:$0xff] %v1156_v48  ;;  %v1157_v39 = vmax.f32 %v1125_v54, 0.0  ;;  %v1128_v52 = vmul.f32 %v1437_v17, %v1911_v16 }
 0x2f8   :  { %1189 = vst [vmem:[#allocation2 + $0xc8] sm:$0xff] %v1157_v39  ;;  %v1160_v53 = vmax.f32 %v1128_v52, 0.0 }
 0x2f9   :  { %v1439_v57 = vpop.eup %1438 }
 0x2fa   :  { %v1441_v4 = vpop.eup %1440  ;;  %1192 = vst [vmem:[#allocation2 + $0xe0] sm:$0xff] %v1160_v53  ;;  %v1130_v36 = vmul.f32 %v1439_v57, %v1916_v20 }
 0x2fb   :  { %v1129_v23 = vmul.f32 %v1441_v4, %v1921_v25 }
 0x2fc   :  { %v1162_v3 = vmax.f32 %v1130_v36, 0.0 }
 0x2fd   :  { %v1161_v59 = vmax.f32 %v1129_v23, 0.0 }
 0x2fe   :  { %v1443_v58 = vpop.eup %1442  ;;  %1194 = vst [vmem:[#allocation2 + $0xf0] sm:$0xff] %v1162_v3 }
 0x2ff   :  { %v1131_v8 = vmul.f32 %v1443_v58, %v1924_v27  ;;  %1193 = vst [vmem:[#allocation2 + $0xe8] sm:$0xff] %v1161_v59 }
 0x301   :  { %v1163_v60 = vmax.f32 %v1131_v8, 0.0 }
 0x303   :  { %1195 = vst [vmem:[#allocation2 + $0xf8] sm:$0xff] %v1163_v60 }
 0x304   :  { %1455 = shalt.err (!%p1452_p4)
}
 0x305   :  { %s1468_s11 = smov 128   ;;  %s1469_s12 = smov 8  }
 0x306   :  { %1207 = dma.vmem_to_hbm [thread:$0]  %s1202_s9, 4096, %s1974_s7, [#allocation3], %s1468_s11, %s1468_s11, %s1469_s12  }
 0x307   :  { %1464 = dma.done.wait [#allocation3], 4096  }
 0x308   :  { %1465 = vsyncadd [#allocation3], 4294963200 }
 0x309   :  { %1211 = vsyncpa [#allocation3], 1 }

</bundles_post_ra>
